<compile_context>
chip_gen: v5e
topology: v5e:2x2
jax: 0.10.0
libtpu: 0.0.40
codegen_flags: <defaults>
</compile_context>

<pallas_src>
import jax
import jax.numpy as jnp
from jax.experimental import pallas as pl
from jax.experimental.pallas import tpu as pltpu

_MiB = 1024 * 1024


# --------------------------------------------------------------------------------------
# chip-aware configuration
# --------------------------------------------------------------------------------------
def _chip_profile():
    """Returns (vmem_budget_bytes, min_parallel_steps, parallel_step_multiple)."""
    kind = ""
    try:
        kind = jax.devices()[0].device_kind.lower()
    except Exception:
        pass
    vmem_cap = None
    try:
        vmem_cap = int(pltpu.get_tpu_info().vmem_capacity_bytes)
    except Exception:
        vmem_cap = None

    if "v7" in kind or (vmem_cap is not None and vmem_cap <= 80 * _MiB):
        # v7x: 64 MiB VMEM, 2 TensorCores share the parallel grid axes.
        return 28 * _MiB, 4, 2
    if "v6" in kind:
        # v6e: 128 MiB VMEM -> big tiles amortize per-grid-step overhead.
        return 56 * _MiB, 1, 1
    if "v5" in kind and ("lite" in kind or "5e" in kind):
        # v5e: 16 MiB default scoped VMEM; stay comfortably under it.
        return 12 * _MiB, 1, 1
    # Unknown generation: conservative default that works everywhere.
    return 14 * _MiB, 1, 1


def _sublane_multiple(dtype):
    return {4: 8, 2: 16, 1: 32}.get(jnp.dtype(dtype).itemsize, 8)


# --------------------------------------------------------------------------------------
# banded / Toeplitz weight matrix
# --------------------------------------------------------------------------------------
def _make_banded_T(weight, C, H, f_dim, H_out_pad, dtype):
    w2 = weight.reshape(C, f_dim).astype(jnp.float32)
    ho = jnp.arange(H_out_pad)[:, None]                 # (H_out_pad, 1)
    hh = jnp.arange(H)[None, :]                         # (1, H)
    kh = ho - hh                                        # tap index per (ho, h)
    valid = (kh >= 0) & (kh < f_dim)
    taps = jnp.take(w2, jnp.clip(kh, 0, f_dim - 1), axis=1)   # (C, H_out_pad, H)
    T = jnp.where(valid[None], taps, 0.0)
    T = jnp.transpose(T, (1, 0, 2)).reshape(H_out_pad, C * H)  # (H_out_pad, C*H)
    return T.astype(dtype)


# --------------------------------------------------------------------------------------
# kernels
# --------------------------------------------------------------------------------------
def _fd_kernel_native(b_ref, t_ref, x_ref, o_ref):
    # b_ref: (1,) f32 bias in SMEM
    # t_ref: (H_out_pad, C*H) banded weights (constant block, VMEM resident)
    # x_ref: (C, H, w_blk) original-layout input block (batch dim squeezed)
    # o_ref: (H_out_pad, w_blk)
    C, H, w_blk = x_ref.shape
    x2 = x_ref[...].reshape(C * H, w_blk)               # free: H % 8 == 0
    y = jnp.dot(t_ref[...], x2, preferred_element_type=jnp.float32)
    o_ref[...] = (y + b_ref[0]).astype(o_ref.dtype)


def _fd_kernel_folded(b_ref, t_ref, x_ref, o_ref, acc_ref):
    # b_ref: (1,) f32 bias in SMEM
    # t_ref: (H_out_pad, k_blk)     K-chunk of banded weights
    # x_ref: (k_blk, lane_block)    lane-dense input chunk
    # o_ref: (H_out_pad, lane_block)
    # acc_ref: f32 accumulator scratch
    k = pl.program_id(1)

    @pl.when(k == 0)
    def _():
        acc_ref[...] = jnp.zeros_like(acc_ref)

    acc_ref[...] += jnp.dot(t_ref[...], x_ref[...], preferred_element_type=jnp.float32)

    @pl.when(k == pl.num_programs(1) - 1)
    def _():
        o_ref[...] = (acc_ref[...] + b_ref[0]).astype(o_ref.dtype)


# --------------------------------------------------------------------------------------
# native-layout path (no wrapper transpose): W % 128 == 0 and H % 8 == 0
# --------------------------------------------------------------------------------------
def _forward_native(x, T, b1, H_out, H_out_pad, budget, min_steps, step_mult):
    N, C, H, W = x.shape
    CH = C * H
    itemsize = jnp.dtype(x.dtype).itemsize

    def working_set(w_blk):
        # 2x double-buffered x block + (conservatively) 2x T + 2x output block.
        return (2 * CH * w_blk * itemsize
                + 2 * H_out_pad * CH * itemsize
                + 2 * H_out_pad * w_blk * itemsize)

    fitting = [c for c in (1024, 512, 256, 128) if W % c == 0 and working_set(c) <= budget]
    if not fitting:
        return None                                     # fall back to lane-folded path

    w_blk = None
    for c in fitting:                                   # largest block with balanced grid
        steps = N * (W // c)
        if steps >= min_steps and steps % step_mult == 0:
            w_blk = c
            break
    if w_blk is None:
        w_blk = fitting[0]

    vmem_limit = int(max(working_set(w_blk) + 4 * _MiB, 32 * _MiB))
    flops = int(2 * H_out_pad * CH * N * W)
    bytes_acc = int((N * CH * W + N * H_out_pad * W + H_out_pad * CH) * itemsize)

    def build(t_mode):
        return pl.pallas_call(
            _fd_kernel_native,
            out_shape=jax.ShapeDtypeStruct((N, H_out_pad, W), x.dtype),
            grid_spec=pltpu.PrefetchScalarGridSpec(
                num_scalar_prefetch=0,
                grid=(N, W // w_blk),
                in_specs=[
                    pl.BlockSpec(memory_space=pltpu.MemorySpace.SMEM),      # bias scalar
                    pl.BlockSpec((H_out_pad, CH), lambda n, w: (0, 0),      # T, VMEM resident
                                 pipeline_mode=t_mode),
                    pl.BlockSpec((pl.Squeezed(), C, H, w_blk),              # x in NCHW layout
                                 lambda n, w: (n, 0, 0, w)),
                ],
                out_specs=pl.BlockSpec((pl.Squeezed(), H_out_pad, w_blk),
                                       lambda n, w: (n, 0, w)),
            ),
            compiler_params=pltpu.CompilerParams(
                dimension_semantics=("parallel", "parallel"),
                vmem_limit_bytes=vmem_limit,
            ),
            cost_estimate=pl.CostEstimate(flops=flops, transcendentals=0,
                                          bytes_accessed=bytes_acc),
        )

    try:
        out3 = build(pl.Buffered(1))(b1, T, x)          # T never changes -> single buffer
    except Exception:
        out3 = build(None)(b1, T, x)

    return out3[:, None, :H_out, :]                     # (N, 1, H_out, W)


# --------------------------------------------------------------------------------------
# lane-folded fallback path (small / misaligned W), with lane padding + optional K-tiling
# --------------------------------------------------------------------------------------
def _forward_folded(x, T_full, b1, H_out, H_out_pad, budget, min_steps, step_mult):
    N, C, H, W = x.shape
    CH = C * H
    P = N * W
    itemsize = jnp.dtype(x.dtype).itemsize

    # Pad the lane axis so stores are always unmasked and the grid always tiles.
    lane_quantum = 512 if P >= 4096 else 128
    P_pad = ((P + lane_quantum - 1) // lane_quantum) * lane_quantum

    def working_set(lane_block, k_blk):
        return (2 * k_blk * lane_block * itemsize       # x blocks (double-buffered)
                + 2 * H_out_pad * k_blk * itemsize      # T blocks (conservative 2x)
                + 2 * H_out_pad * lane_block * itemsize # out blocks
                + H_out_pad * lane_block * 4)           # f32 accumulator scratch

    lane_cands = [c for c in (8192, 4096, 2048, 1024, 512, 256, 128) if P_pad % c == 0]

    lane_block, k_blk = None, CH
    fitting = [c for c in lane_cands if working_set(c, CH) <= budget]
    if fitting:
        for c in fitting:                               # largest block with balanced grid
            steps = P_pad // c
            if steps >= min_steps and steps % step_mult == 0:
                lane_block = c
                break
        if lane_block is None:
            lane_block = fitting[0]
    else:
        # K-tile the contraction instead of shrinking the lane block below 512/256/128.
        lane_block = next(c for c in (512, 256, 128) if P_pad % c == 0)
        k_blk = 128
        while 2 * k_blk < CH and working_set(lane_block, 2 * k_blk) <= budget:
            k_blk *= 2

    CH_pad = ((CH + k_blk - 1) // k_blk) * k_blk
    k_steps = CH_pad // k_blk

    # Lane-dense slab (C*H, N*W), zero-padded on both padded axes.
    x2 = jnp.transpose(x, (1, 2, 0, 3)).reshape(CH, P)
    x2 = jnp.pad(x2, ((0, CH_pad - CH), (0, P_pad - P)))
    T = T_full if CH_pad == CH else jnp.pad(T_full, ((0, 0), (0, CH_pad - CH)))

    vmem_limit = int(max(working_set(lane_block, k_blk) + 4 * _MiB, 32 * _MiB))
    flops = int(2 * H_out_pad * CH_pad * P_pad)
    bytes_acc = int((CH_pad * P_pad + H_out_pad * P_pad + H_out_pad * CH_pad) * itemsize)

    def build(t_mode):
        return pl.pallas_call(
            _fd_kernel_folded,
            out_shape=jax.ShapeDtypeStruct((H_out_pad, P_pad), x.dtype),
            grid_spec=pltpu.PrefetchScalarGridSpec(
                num_scalar_prefetch=0,
                grid=(P_pad // lane_block, k_steps),
                in_specs=[
                    pl.BlockSpec(memory_space=pltpu.MemorySpace.SMEM),      # bias scalar
                    pl.BlockSpec((H_out_pad, k_blk), lambda i, k: (0, k),   # T (K-chunk)
                                 pipeline_mode=t_mode),
                    pl.BlockSpec((k_blk, lane_block), lambda i, k: (k, i)), # x slab chunk
                ],
                out_specs=pl.BlockSpec((H_out_pad, lane_block), lambda i, k: (0, i)),
                scratch_shapes=[pltpu.VMEM((H_out_pad, lane_block), jnp.float32)],
            ),
            compiler_params=pltpu.CompilerParams(
                dimension_semantics=("parallel", "arbitrary"),
                vmem_limit_bytes=vmem_limit,
            ),
            cost_estimate=pl.CostEstimate(flops=flops, transcendentals=0,
                                          bytes_accessed=bytes_acc),
        )

    try:
        t_mode = pl.Buffered(1) if k_steps == 1 else None
        out2 = build(t_mode)(b1, T, x2)
    except Exception:
        out2 = build(None)(b1, T, x2)

    out = out2[:H_out, :P].reshape(H_out, N, W)
    return jnp.transpose(out, (1, 0, 2))[:, None, :, :]


# --------------------------------------------------------------------------------------
# public forward
# --------------------------------------------------------------------------------------
def filterdecoder_forward(x, weight, bias):
    """x: (N, C, H, W); weight: (C, 1, f_dim, 1); bias: (1,). Returns (N, 1, H_out, W)."""
    N, C, H, W = x.shape
    f_dim = weight.shape[2]
    H_out = H + f_dim - 1
    sub = _sublane_multiple(x.dtype)
    H_out_pad = ((H_out + sub - 1) // sub) * sub

    budget, min_steps, step_mult = _chip_profile()
    T = _make_banded_T(weight, C, H, f_dim, H_out_pad, x.dtype)
    b1 = bias.reshape(1).astype(jnp.float32)

    # Transpose-free native-layout path when x's trailing dims are lane/sublane aligned.
    if W % 128 == 0 and H % 8 == 0:
        try:
            out = _forward_native(x, T, b1, H_out, H_out_pad, budget, min_steps, step_mult)
            if out is not None:
                return out
        except Exception:
            pass  # fall back to the always-valid lane-folded path

    return _forward_folded(x, T, b1, H_out, H_out_pad, budget, min_steps, step_mult)


# --------------------------------------------------------------------------------------
# pure-JAX reference
# --------------------------------------------------------------------------------------
def _reference(x, weight, bias):
    N, C, H, W = x.shape
    f_dim = weight.shape[2]
    H_out = H + f_dim - 1
    w2d = weight.reshape(C, f_dim)
    out = jnp.zeros((N, H_out, W), jnp.float32)
    for kh in range(f_dim):
        y = jnp.einsum("nchw,c->nhw", x.astype(jnp.float32), w2d[:, kh])
        out = out + jnp.pad(y, ((0, 0), (kh, f_dim - 1 - kh), (0, 0)))
    out = out + bias[0]
    return out[:, None, :, :].astype(x.dtype)


if __name__ == "__main__":
    key = jax.random.PRNGKey(0)
    kx, kw, kb, kx2 = jax.random.split(key, 4)

    # Small shapes consistent with the module: dim = in channels, f_dim = kernel height.
    N, dim, H, W = 2, 4, 16, 16
    f_dim = 3
    x = jax.random.normal(kx, (N, dim, H, W), dtype=jnp.float32)
    # ConvTranspose2d weight shape: (in_ch, out_ch, kH, kW).
    weight = 0.1 * jax.random.normal(kw, (dim, 1, f_dim, 1), dtype=jnp.float32)
    bias = 0.05 * jax.random.normal(kb, (1,), dtype=jnp.float32)

    out = jax.block_until_ready(filterdecoder_forward(x, weight, bias))
    ref = _reference(x, weight, bias)
    assert out.shape == (N, 1, H + f_dim - 1, W), out.shape
    assert jnp.allclose(out, ref, atol=1e-5, rtol=1e-5), float(jnp.max(jnp.abs(out - ref)))

    # Also exercise the transpose-free native-layout path (W multiple of 128).
    W2 = 128
    x_b = jax.random.normal(kx2, (N, dim, H, W2), dtype=jnp.float32)
    out_b = jax.block_until_ready(filterdecoder_forward(x_b, weight, bias))
    ref_b = _reference(x_b, weight, bias)
    assert out_b.shape == (N, 1, H + f_dim - 1, W2), out_b.shape
    assert jnp.allclose(out_b, ref_b, atol=1e-5, rtol=1e-5), float(jnp.max(jnp.abs(out_b - ref_b)))

    print("KERNEL_OK")
</pallas_src>

<mosaic_0001>
module attributes {stable_mosaic.version = 11 : i64} {
  func.func @_fd_kernel_folded(%arg0: i32, %arg1: i32, %arg2: memref<1xf32, #tpu.memory_space<smem>>, %arg3: memref<24x64xf32, #tpu.memory_space<vmem>>, %arg4: memref<64x128xf32, #tpu.memory_space<vmem>>, %arg5: memref<24x128xf32, #tpu.memory_space<vmem>>, %arg6: memref<24x128xf32, #tpu.memory_space<vmem>>) attributes {dimension_semantics = [#tpu.dimension_semantics<parallel>, #tpu.dimension_semantics<arbitrary>], iteration_bounds = array<i64: 1, 1>, scalar_prefetch = 0 : i64, scratch_operands = 1 : i64, tpu.core_type = #tpu.core_type<tc>, window_params = [{transform_indices = @transform_0, window_bounds = array<i64: 1>}, {pipeline_mode = #tpu.pipeline_mode<synchronous>, transform_indices = @transform_1, window_bounds = array<i64: 24, 64>}, {transform_indices = @transform_2, window_bounds = array<i64: 64, 128>}, {transform_indices = @transform_3, window_bounds = array<i64: 24, 128>}]} {
    %c0_i32 = arith.constant 0 : i32
    %0 = arith.cmpi eq, %arg1, %c0_i32 : i32
    %1 = arith.extui %0 : i1 to i32
    %c0_i32_0 = arith.constant 0 : i32
    %2 = arith.cmpi ne, %1, %c0_i32_0 : i32
    scf.if %2 {
      %cst_10 = arith.constant 0.000000e+00 : f32
      %12 = vector.broadcast %cst_10 : f32 to vector<24x128xf32>
      %c0_11 = arith.constant 0 : index
      %c0_12 = arith.constant 0 : index
      %13 = vector.load %arg6[%c0_11, %c0_12] : memref<24x128xf32, #tpu.memory_space<vmem>>, vector<24x128xf32>
      tpu.vector_store %arg6[%c0_11, %c0_12], %12 {strides = array<i32>} : memref<24x128xf32, #tpu.memory_space<vmem>>, vector<24x128xf32>,
    } else {
    }
    %c0 = arith.constant 0 : index
    %c0_1 = arith.constant 0 : index
    %3 = vector.load %arg6[%c0, %c0_1] : memref<24x128xf32, #tpu.memory_space<vmem>>, vector<24x128xf32>
    %c0_2 = arith.constant 0 : index
    %c0_3 = arith.constant 0 : index
    %4 = vector.load %arg3[%c0_2, %c0_3] : memref<24x64xf32, #tpu.memory_space<vmem>>, vector<24x64xf32>
    %c0_4 = arith.constant 0 : index
    %c0_5 = arith.constant 0 : index
    %5 = vector.load %arg4[%c0_4, %c0_5] : memref<64x128xf32, #tpu.memory_space<vmem>>, vector<64x128xf32>
    %cst = arith.constant dense<0.000000e+00> : vector<24x128xf32>
    %6 = tpu.matmul %4, %5, %cst {dimension_numbers = #tpu.dot_dimension_numbers<[1], [0], [0], [1], [0, 0, 1, 1], [], []>} : vector<24x64xf32>, vector<64x128xf32>, vector<24x128xf32> -> vector<24x128xf32>
    %7 = arith.addf %3, %6 : vector<24x128xf32>
    %c0_6 = arith.constant 0 : index
    %c0_7 = arith.constant 0 : index
    %8 = vector.load %arg6[%c0_6, %c0_7] : memref<24x128xf32, #tpu.memory_space<vmem>>, vector<24x128xf32>
    tpu.vector_store %arg6[%c0_6, %c0_7], %7 {strides = array<i32>} : memref<24x128xf32, #tpu.memory_space<vmem>>, vector<24x128xf32>,
    %c0_i32_8 = arith.constant 0 : i32
    %9 = arith.cmpi eq, %arg1, %c0_i32_8 : i32
    %10 = arith.extui %9 : i1 to i32
    %c0_i32_9 = arith.constant 0 : i32
    %11 = arith.cmpi ne, %10, %c0_i32_9 : i32
    scf.if %11 {
      %c0_10 = arith.constant 0 : index
      %c0_11 = arith.constant 0 : index
      %12 = vector.load %arg6[%c0_10, %c0_11] : memref<24x128xf32, #tpu.memory_space<vmem>>, vector<24x128xf32>
      %c0_12 = arith.constant 0 : index
      %13 = memref.load %arg2[%c0_12] : memref<1xf32, #tpu.memory_space<smem>>
      %14 = vector.broadcast %13 : f32 to vector<24x128xf32>
      %15 = arith.addf %12, %14 : vector<24x128xf32>
      %c0_13 = arith.constant 0 : index
      %c0_14 = arith.constant 0 : index
      %16 = vector.load %arg5[%c0_13, %c0_14] : memref<24x128xf32, #tpu.memory_space<vmem>>, vector<24x128xf32>
      tpu.vector_store %arg5[%c0_13, %c0_14], %15 {strides = array<i32>} : memref<24x128xf32, #tpu.memory_space<vmem>>, vector<24x128xf32>,
    } else {
    }
    return
  }
  func.func @transform_0(%arg0: i32, %arg1: i32) -> i32 {
    %c0_i32 = arith.constant 0 : i32
    %c0_i32_0 = arith.constant 0 : i32
    return %c0_i32 : i32
  }
  func.func @transform_1(%arg0: i32, %arg1: i32) -> (i32, i32) {
    %c0_i32 = arith.constant 0 : i32
    %c0_i32_0 = arith.constant 0 : i32
    return %c0_i32, %arg1 : i32, i32
  }
  func.func @transform_2(%arg0: i32, %arg1: i32) -> (i32, i32) {
    %c0_i32 = arith.constant 0 : i32
    return %arg1, %arg0 : i32, i32
  }
  func.func @transform_3(%arg0: i32, %arg1: i32) -> (i32, i32) {
    %c0_i32 = arith.constant 0 : i32
    %c0_i32_0 = arith.constant 0 : i32
    return %c0_i32, %arg0 : i32, i32
  }
}

module attributes {stable_mosaic.version = 11 : i64} {
  func.func @_fd_kernel_folded(%arg0: i32, %arg1: i32, %arg2: memref<1xf32, #tpu.memory_space<smem>>, %arg3: memref<24x64xf32, #tpu.memory_space<vmem>>, %arg4: memref<64x128xf32, #tpu.memory_space<vmem>>, %arg5: memref<24x128xf32, #tpu.memory_space<vmem>>, %arg6: memref<24x128xf32, #tpu.memory_space<vmem>>) attributes {dimension_semantics = [#tpu.dimension_semantics<parallel>, #tpu.dimension_semantics<arbitrary>], iteration_bounds = array<i64: 1, 1>, scalar_prefetch = 0 : i64, scratch_operands = 1 : i64, tpu.core_type = #tpu.core_type<tc>, window_params = [{transform_indices = @transform_0, window_bounds = array<i64: 1>}, {transform_indices = @transform_1, window_bounds = array<i64: 24, 64>}, {transform_indices = @transform_2, window_bounds = array<i64: 64, 128>}, {transform_indices = @transform_3, window_bounds = array<i64: 24, 128>}]} {
    %c0_i32 = arith.constant 0 : i32
    %0 = arith.cmpi eq, %arg1, %c0_i32 : i32
    %1 = arith.extui %0 : i1 to i32
    %c0_i32_0 = arith.constant 0 : i32
    %2 = arith.cmpi ne, %1, %c0_i32_0 : i32
    scf.if %2 {
      %cst_10 = arith.constant 0.000000e+00 : f32
      %12 = vector.broadcast %cst_10 : f32 to vector<24x128xf32>
      %c0_11 = arith.constant 0 : index
      %c0_12 = arith.constant 0 : index
      %13 = vector.load %arg6[%c0_11, %c0_12] : memref<24x128xf32, #tpu.memory_space<vmem>>, vector<24x128xf32>
      tpu.vector_store %arg6[%c0_11, %c0_12], %12 {strides = array<i32>} : memref<24x128xf32, #tpu.memory_space<vmem>>, vector<24x128xf32>,
    } else {
    }
    %c0 = arith.constant 0 : index
    %c0_1 = arith.constant 0 : index
    %3 = vector.load %arg6[%c0, %c0_1] : memref<24x128xf32, #tpu.memory_space<vmem>>, vector<24x128xf32>
    %c0_2 = arith.constant 0 : index
    %c0_3 = arith.constant 0 : index
    %4 = vector.load %arg3[%c0_2, %c0_3] : memref<24x64xf32, #tpu.memory_space<vmem>>, vector<24x64xf32>
    %c0_4 = arith.constant 0 : index
    %c0_5 = arith.constant 0 : index
    %5 = vector.load %arg4[%c0_4, %c0_5] : memref<64x128xf32, #tpu.memory_space<vmem>>, vector<64x128xf32>
    %cst = arith.constant dense<0.000000e+00> : vector<24x128xf32>
    %6 = tpu.matmul %4, %5, %cst {dimension_numbers = #tpu.dot_dimension_numbers<[1], [0], [0], [1], [0, 0, 1, 1], [], []>} : vector<24x64xf32>, vector<64x128xf32>, vector<24x128xf32> -> vector<24x128xf32>
    %7 = arith.addf %3, %6 : vector<24x128xf32>
    %c0_6 = arith.constant 0 : index
    %c0_7 = arith.constant 0 : index
    %8 = vector.load %arg6[%c0_6, %c0_7] : memref<24x128xf32, #tpu.memory_space<vmem>>, vector<24x128xf32>
    tpu.vector_store %arg6[%c0_6, %c0_7], %7 {strides = array<i32>} : memref<24x128xf32, #tpu.memory_space<vmem>>, vector<24x128xf32>,
    %c0_i32_8 = arith.constant 0 : i32
    %9 = arith.cmpi eq, %arg1, %c0_i32_8 : i32
    %10 = arith.extui %9 : i1 to i32
    %c0_i32_9 = arith.constant 0 : i32
    %11 = arith.cmpi ne, %10, %c0_i32_9 : i32
    scf.if %11 {
      %c0_10 = arith.constant 0 : index
      %c0_11 = arith.constant 0 : index
      %12 = vector.load %arg6[%c0_10, %c0_11] : memref<24x128xf32, #tpu.memory_space<vmem>>, vector<24x128xf32>
      %c0_12 = arith.constant 0 : index
      %13 = memref.load %arg2[%c0_12] : memref<1xf32, #tpu.memory_space<smem>>
      %14 = vector.broadcast %13 : f32 to vector<24x128xf32>
      %15 = arith.addf %12, %14 : vector<24x128xf32>
      %c0_13 = arith.constant 0 : index
      %c0_14 = arith.constant 0 : index
      %16 = vector.load %arg5[%c0_13, %c0_14] : memref<24x128xf32, #tpu.memory_space<vmem>>, vector<24x128xf32>
      tpu.vector_store %arg5[%c0_13, %c0_14], %15 {strides = array<i32>} : memref<24x128xf32, #tpu.memory_space<vmem>>, vector<24x128xf32>,
    } else {
    }
    return
  }
  func.func @transform_0(%arg0: i32, %arg1: i32) -> i32 {
    %c0_i32 = arith.constant 0 : i32
    %c0_i32_0 = arith.constant 0 : i32
    return %c0_i32 : i32
  }
  func.func @transform_1(%arg0: i32, %arg1: i32) -> (i32, i32) {
    %c0_i32 = arith.constant 0 : i32
    %c0_i32_0 = arith.constant 0 : i32
    return %c0_i32, %arg1 : i32, i32
  }
  func.func @transform_2(%arg0: i32, %arg1: i32) -> (i32, i32) {
    %c0_i32 = arith.constant 0 : i32
    return %arg1, %arg0 : i32, i32
  }
  func.func @transform_3(%arg0: i32, %arg1: i32) -> (i32, i32) {
    %c0_i32 = arith.constant 0 : i32
    %c0_i32_0 = arith.constant 0 : i32
    return %c0_i32, %arg0 : i32, i32
  }
}

</mosaic_0001>

<bundles_post_ra>
// kernel: tpu_custom_call.1
= control target key start
LH: loop header
LB: loop body
LE: loop exit
PB: predicated region body
PF: predicated region fallthrough
CT: control target
= control target key end

     0   :  { %9 = vsyncpa [#allocation5], 0  ;;  %s293_s0 = inlined_call_operand.<no memory space> [shape: f32[1], index: 0, kind: input, shape index: {}]   ;;  %s294_s1 = inlined_call_operand.hbm [shape: f32[24,64], index: 1, kind: input, shape index: {}]   ;;  %s295_s2 = inlined_call_operand.hbm [shape: f32[64,128], index: 2, kind: input, shape index: {}]   ;;  %s296_s3 = inlined_call_operand.hbm [shape: f32[24,128], index: 3, kind: output, shape index: {}]  }
   0x1   :  { %10 = vsyncpa [#allocation8], 0 }
   0x2   :  { %11 = vsyncpa [#allocation6], 0  ;;  %s18_s14 = sshll.u32 %s294_s1, 4  ;;  %s247_s15 = smov [#allocation4]   ;;  %s19_s14 = int_to_ptr.hbm [resolvable:$true] %s18_s14 }
   0x3   :  { %s20_s16 = sshll.u32 %s247_s15, 4  ;;  %s31_s19 = sshll.u32 %s295_s2, 4  ;;  %s21_s16 = int_to_ptr.vmem [resolvable:$true] %s20_s16  ;;  %s32_s19 = int_to_ptr.hbm [resolvable:$true] %s31_s19 }
   0x4   :  { %s248_s20 = smov 128   ;;  %s249_s21 = smov 8  }
   0x5   :  { %26 = dma.hbm_to_vmem [thread:$0]  %s19_s14, 384, %s21_s16, [#allocation5], %s248_s20, %s248_s20, %s249_s21  }
   0x6   :  { %s250_s22 = smov [#allocation7]  }
   0x7   :  { %s33_s23 = sshll.u32 %s250_s22, 4  ;;  %s34_s23 = int_to_ptr.vmem [resolvable:$true] %s33_s23 }
   0x8   :  { %39 = dma.hbm_to_vmem [thread:$0]  %s32_s19, 1024, %s34_s23, [#allocation8], %s248_s20, %s248_s20, %s249_s21  }
   0x9   :  { %241 = dma.done.wait [#allocation5], 384  }
   0xa   :  { %242 = vsyncadd [#allocation5], 4294966912 }
   0xb   :  { %243 = dma.done.wait [#allocation8], 1024  }
   0xc   :  { %244 = vsyncadd [#allocation8], 4294966272  ;;  %v68_v0 = vld [vmem:[#allocation7 + $0x38] sm:$0xff]  ;;  %v67_v1 = vld [vmem:[#allocation7 + $0x30] sm:$0xff]  ;;  %vm69_vm0 = vcmask 523264   ;;  %v118_v11 = vstv %s293_s0  ;;  %s251_s24 = smov [#allocation9]  }
   0xd   :  { %149 = vmatpush.msra.mxu2 %v68_v0  ;;  %87 = vmatpush.msra.mxu0 %v68_v0  ;;  %v66_v2 = vld [vmem:[#allocation7 + $0x28] sm:$0xff]  ;;  %v65_v3 = vld [vmem:[#allocation7 + $0x20] sm:$0xff]  ;;  %v64_v4 = vld [vmem:[#allocation7 + $0x18] sm:$0xff]  ;;  %s129_s25 = sshll.u32 %s251_s24, 4  ;;  %s131_s28 = sshll.u32 %s296_s3, 4  ;;  %s130_s25 = int_to_ptr.vmem [resolvable:$true] %s129_s25  ;;  %s132_s28 = int_to_ptr.hbm [resolvable:$true] %s131_s28 }
   0xe   :  { %148 = vmatpush.msra.mxu1 %v68_v0  ;;  %v63_v5 = vld [vmem:[#allocation7 + $0x10] sm:$0xff]  ;;  %v62_v6 = vld [vmem:[#allocation7 + $0x8] sm:$0xff]  ;;  %v61_v7 = vld [vmem:[#allocation7] sm:$0xff] }
   0xf   :  { %151 = vmatpush.msra.mxu2 %v67_v1  ;;  %88 = vmatpush.msra.mxu0 %v67_v1  ;;  %v60_v8 = vld [vmem:[#allocation4 + $0x10] sm:$0xff]  ;;  %v58_v9 = vld [vmem:[#allocation4] sm:$0xff]  ;;  %v59_v10 = vld [vmem:[#allocation4 + $0x8] sm:$0xff] }
  0x10   :  { %150 = vmatpush.msra.mxu1 %v67_v1 }
  0x11   :  { %153 = vmatpush.msra.mxu2 %v66_v2  ;;  %89 = vmatpush.msra.mxu0 %v66_v2 }
  0x12   :  { %152 = vmatpush.msra.mxu1 %v66_v2 }
  0x13   :  { %155 = vmatpush.msra.mxu2 %v65_v3  ;;  %90 = vmatpush.msra.mxu0 %v65_v3 }
  0x14   :  { %154 = vmatpush.msra.mxu1 %v65_v3 }
  0x15   :  { %157 = vmatpush.msra.mxu2 %v64_v4  ;;  %91 = vmatpush.msra.mxu0 %v64_v4 }
  0x16   :  { %156 = vmatpush.msra.mxu1 %v64_v4 }
  0x17   :  { %159 = vmatpush.msra.mxu2 %v63_v5  ;;  %92 = vmatpush.msra.mxu0 %v63_v5 }
  0x18   :  { %158 = vmatpush.msra.mxu1 %v63_v5 }
  0x19   :  { %161 = vmatpush.msra.mxu2 %v62_v6  ;;  %93 = vmatpush.msra.mxu0 %v62_v6 }
  0x1a   :  { %160 = vmatpush.msra.mxu1 %v62_v6 }
  0x1b   :  { %163 = vmatpush.msra.mxu2 %v61_v7  ;;  %94 = vmatpush.msra.mxu0 %v61_v7 }
  0x1c   :  { %147 = vmatmul.msk.f32.vlgmr.msra.gmra.mxu2 %vm69_vm0, %v60_v8  ;;  %162 = vmatpush.msra.mxu1 %v61_v7 }
  0x1d   :  { %145 = vmatmul.msk.f32.vlgmr.msra.gmra.mxu0 %vm69_vm0, %v58_v9  ;;  %146 = vmatmul.msk.f32.vlgmr.msra.gmra.mxu1 %vm69_vm0, %v59_v10 }
  0x9a   :  { %v96_v12 = vpop.f32.mrf.mxu0  ;;  %v99_v13 = vpop.f32.mrf.mxu1 }
  0x9b   :  { %v119_v14 = vadd.f32 %v118_v11, %v96_v12  ;;  %v120_v15 = vadd.f32 %v118_v11, %v99_v13 }
  0x9d   :  { %122 = vst [vmem:[#allocation9] sm:$0xff] %v119_v14 }
  0x9e   :  { %123 = vst [vmem:[#allocation9 + $0x8] sm:$0xff] %v120_v15 }
  0x9f   :  { %v102_v16 = vpop.f32.mrf.mxu2 }
  0xa0   :  { %v121_v17 = vadd.f32 %v118_v11, %v102_v16 }
  0xa2   :  { %124 = vst [vmem:[#allocation9 + $0x10] sm:$0xff] %v121_v17 }
  0xa3   :  { %137 = dma.vmem_to_hbm [thread:$0]  %s130_s25, 384, %s132_s28, [#allocation6], %s248_s20, %s248_s20, %s249_s21  }
  0xa4   :  { %245 = dma.done.wait [#allocation6], 384  }
  0xa5   :  { %246 = vsyncadd [#allocation6], 4294966912 }
  0xa6   :  { %142 = vsyncpa [#allocation5], 1 }
  0xa7   :  { %143 = vsyncpa [#allocation8], 1 }
  0xa8   :  { %144 = vsyncpa [#allocation6], 1 }

// kernel: tpu_custom_call.1
= control target key start
LH: loop header
LB: loop body
LE: loop exit
PB: predicated region body
PF: predicated region fallthrough
CT: control target
= control target key end

     0   :  { %9 = vsyncpa [#allocation5], 0  ;;  %s293_s0 = inlined_call_operand.<no memory space> [shape: f32[1], index: 0, kind: input, shape index: {}]   ;;  %s294_s1 = inlined_call_operand.hbm [shape: f32[24,64], index: 1, kind: input, shape index: {}]   ;;  %s295_s2 = inlined_call_operand.hbm [shape: f32[64,128], index: 2, kind: input, shape index: {}]   ;;  %s296_s3 = inlined_call_operand.hbm [shape: f32[24,128], index: 3, kind: output, shape index: {}]  }
   0x1   :  { %10 = vsyncpa [#allocation8], 0 }
   0x2   :  { %11 = vsyncpa [#allocation6], 0  ;;  %s18_s14 = sshll.u32 %s294_s1, 4  ;;  %s247_s15 = smov [#allocation4]   ;;  %s19_s14 = int_to_ptr.hbm [resolvable:$true] %s18_s14 }
   0x3   :  { %s20_s16 = sshll.u32 %s247_s15, 4  ;;  %s31_s19 = sshll.u32 %s295_s2, 4  ;;  %s21_s16 = int_to_ptr.vmem [resolvable:$true] %s20_s16  ;;  %s32_s19 = int_to_ptr.hbm [resolvable:$true] %s31_s19 }
   0x4   :  { %s248_s20 = smov 128   ;;  %s249_s21 = smov 8  }
   0x5   :  { %26 = dma.hbm_to_vmem [thread:$0]  %s19_s14, 384, %s21_s16, [#allocation5], %s248_s20, %s248_s20, %s249_s21  }
   0x6   :  { %s250_s22 = smov [#allocation7]  }
   0x7   :  { %s33_s23 = sshll.u32 %s250_s22, 4  ;;  %s34_s23 = int_to_ptr.vmem [resolvable:$true] %s33_s23 }
   0x8   :  { %39 = dma.hbm_to_vmem [thread:$0]  %s32_s19, 1024, %s34_s23, [#allocation8], %s248_s20, %s248_s20, %s249_s21  }
   0x9   :  { %241 = dma.done.wait [#allocation5], 384  }
   0xa   :  { %242 = vsyncadd [#allocation5], 4294966912 }
   0xb   :  { %243 = dma.done.wait [#allocation8], 1024  }
   0xc   :  { %244 = vsyncadd [#allocation8], 4294966272  ;;  %v68_v0 = vld [vmem:[#allocation7 + $0x38] sm:$0xff]  ;;  %v67_v1 = vld [vmem:[#allocation7 + $0x30] sm:$0xff]  ;;  %vm69_vm0 = vcmask 523264   ;;  %v118_v11 = vstv %s293_s0  ;;  %s251_s24 = smov [#allocation9]  }
   0xd   :  { %149 = vmatpush.msra.mxu2 %v68_v0  ;;  %87 = vmatpush.msra.mxu0 %v68_v0  ;;  %v66_v2 = vld [vmem:[#allocation7 + $0x28] sm:$0xff]  ;;  %v65_v3 = vld [vmem:[#allocation7 + $0x20] sm:$0xff]  ;;  %v64_v4 = vld [vmem:[#allocation7 + $0x18] sm:$0xff]  ;;  %s129_s25 = sshll.u32 %s251_s24, 4  ;;  %s131_s28 = sshll.u32 %s296_s3, 4  ;;  %s130_s25 = int_to_ptr.vmem [resolvable:$true] %s129_s25  ;;  %s132_s28 = int_to_ptr.hbm [resolvable:$true] %s131_s28 }
   0xe   :  { %148 = vmatpush.msra.mxu1 %v68_v0  ;;  %v63_v5 = vld [vmem:[#allocation7 + $0x10] sm:$0xff]  ;;  %v62_v6 = vld [vmem:[#allocation7 + $0x8] sm:$0xff]  ;;  %v61_v7 = vld [vmem:[#allocation7] sm:$0xff] }
   0xf   :  { %151 = vmatpush.msra.mxu2 %v67_v1  ;;  %88 = vmatpush.msra.mxu0 %v67_v1  ;;  %v60_v8 = vld [vmem:[#allocation4 + $0x10] sm:$0xff]  ;;  %v58_v9 = vld [vmem:[#allocation4] sm:$0xff]  ;;  %v59_v10 = vld [vmem:[#allocation4 + $0x8] sm:$0xff] }
  0x10   :  { %150 = vmatpush.msra.mxu1 %v67_v1 }
  0x11   :  { %153 = vmatpush.msra.mxu2 %v66_v2  ;;  %89 = vmatpush.msra.mxu0 %v66_v2 }
  0x12   :  { %152 = vmatpush.msra.mxu1 %v66_v2 }
  0x13   :  { %155 = vmatpush.msra.mxu2 %v65_v3  ;;  %90 = vmatpush.msra.mxu0 %v65_v3 }
  0x14   :  { %154 = vmatpush.msra.mxu1 %v65_v3 }
  0x15   :  { %157 = vmatpush.msra.mxu2 %v64_v4  ;;  %91 = vmatpush.msra.mxu0 %v64_v4 }
  0x16   :  { %156 = vmatpush.msra.mxu1 %v64_v4 }
  0x17   :  { %159 = vmatpush.msra.mxu2 %v63_v5  ;;  %92 = vmatpush.msra.mxu0 %v63_v5 }
  0x18   :  { %158 = vmatpush.msra.mxu1 %v63_v5 }
  0x19   :  { %161 = vmatpush.msra.mxu2 %v62_v6  ;;  %93 = vmatpush.msra.mxu0 %v62_v6 }
  0x1a   :  { %160 = vmatpush.msra.mxu1 %v62_v6 }
  0x1b   :  { %163 = vmatpush.msra.mxu2 %v61_v7  ;;  %94 = vmatpush.msra.mxu0 %v61_v7 }
  0x1c   :  { %147 = vmatmul.msk.f32.vlgmr.msra.gmra.mxu2 %vm69_vm0, %v60_v8  ;;  %162 = vmatpush.msra.mxu1 %v61_v7 }
  0x1d   :  { %145 = vmatmul.msk.f32.vlgmr.msra.gmra.mxu0 %vm69_vm0, %v58_v9  ;;  %146 = vmatmul.msk.f32.vlgmr.msra.gmra.mxu1 %vm69_vm0, %v59_v10 }
  0x9a   :  { %v96_v12 = vpop.f32.mrf.mxu0  ;;  %v99_v13 = vpop.f32.mrf.mxu1 }
  0x9b   :  { %v119_v14 = vadd.f32 %v118_v11, %v96_v12  ;;  %v120_v15 = vadd.f32 %v118_v11, %v99_v13 }
  0x9d   :  { %122 = vst [vmem:[#allocation9] sm:$0xff] %v119_v14 }
  0x9e   :  { %123 = vst [vmem:[#allocation9 + $0x8] sm:$0xff] %v120_v15 }
  0x9f   :  { %v102_v16 = vpop.f32.mrf.mxu2 }
  0xa0   :  { %v121_v17 = vadd.f32 %v118_v11, %v102_v16 }
  0xa2   :  { %124 = vst [vmem:[#allocation9 + $0x10] sm:$0xff] %v121_v17 }
  0xa3   :  { %137 = dma.vmem_to_hbm [thread:$0]  %s130_s25, 384, %s132_s28, [#allocation6], %s248_s20, %s248_s20, %s249_s21  }
  0xa4   :  { %245 = dma.done.wait [#allocation6], 384  }
  0xa5   :  { %246 = vsyncadd [#allocation6], 4294966912 }
  0xa6   :  { %142 = vsyncpa [#allocation5], 1 }
  0xa7   :  { %143 = vsyncpa [#allocation8], 1 }
  0xa8   :  { %144 = vsyncpa [#allocation6], 1 }

</bundles_post_ra>
